<compile_context>
chip_gen: v5e
topology: v5e:2x2
jax: 0.10.0
libtpu: 0.0.40
codegen_flags: <defaults>
</compile_context>

<pallas_src>
import functools

import jax
import jax.numpy as jnp
from jax.experimental import pallas as pl
from jax.experimental.pallas import tpu as pltpu

NUM_INPUTS = 784            # 28 * 28
NUM_OUTPUTS = 10
K_PAD = 896                 # next multiple of 128 above 784
N_PAD = 128                 # lane-dense output width


def _softmaxnet_kernel(x_ref, w_ref, b_ref, o_ref):
    # x_ref: (TM, K_PAD)  w_ref: (K_PAD, N_PAD)  b_ref: (1, N_PAD)  o_ref: (TM, N_PAD)
    acc = jnp.dot(x_ref[...], w_ref[...], preferred_element_type=jnp.float32)
    o_ref[...] = (acc + b_ref[...]).astype(o_ref.dtype)


def _round_up(n, m):
    return ((n + m - 1) // m) * m


@functools.partial(jax.jit, static_argnames=("tile_m", "compute_dtype"))
def softmaxnet_forward(x, w, b, *, tile_m=None, compute_dtype=None):
    """y = W @ flatten(x) + b.

    x: (B, 1, 28, 28) float32; w: (784, 10) stored as (in, out); b: (10,).
    Returns (B, 10) float32 logits.
    """
    B = x.shape[0]
    x2d = x.reshape(B, -1)                     # glue: flatten (plain JAX)
    assert x2d.shape[1] == NUM_INPUTS

    if compute_dtype is not None:              # e.g. bf16 stream, f32 accumulate
        x2d = x2d.astype(compute_dtype)
        w = w.astype(compute_dtype)

    # Large, roofline-friendly row tile; capped so a double-buffered f32 block
    # (tile_m*896*4 bytes) stays comfortably inside v7x's smaller VMEM.
    if tile_m is None:
        tile_m = min(1024, _round_up(B, 8))
    B_pad = _round_up(B, tile_m)

    # Pad once in the wrapper:
    #   rows  B -> B_pad   (ragged batches; pad rows sliced off afterwards)
    #   K   784 -> 896     (unmasked vld / vmatmul tiling)
    #   N    10 -> 128     (lane-dense stores; zero cols are free on the MXU)
    x_p = jnp.pad(x2d, ((0, B_pad - B), (0, K_PAD - NUM_INPUTS)))
    w_p = jnp.pad(w, ((0, K_PAD - NUM_INPUTS), (0, N_PAD - NUM_OUTPUTS)))
    b_p = jnp.pad(b.astype(jnp.float32).reshape(1, NUM_OUTPUTS),
                  ((0, 0), (0, N_PAD - NUM_OUTPUTS)))

    grid = (B_pad // tile_m,)
    cost = pl.CostEstimate(
        flops=2 * B_pad * K_PAD * N_PAD,
        transcendentals=0,
        bytes_accessed=(B_pad * K_PAD * x_p.dtype.itemsize
                        + K_PAD * N_PAD * w_p.dtype.itemsize
                        + N_PAD * 4
                        + B_pad * N_PAD * 4),
    )

    y_pad = pl.pallas_call(
        _softmaxnet_kernel,
        out_shape=jax.ShapeDtypeStruct((B_pad, N_PAD), jnp.float32),
        grid_spec=pltpu.PrefetchScalarGridSpec(
            num_scalar_prefetch=0,
            grid=grid,
            in_specs=[
                pl.BlockSpec((tile_m, K_PAD), lambda i: (i, 0)),
                pl.BlockSpec((K_PAD, N_PAD), lambda i: (0, 0)),   # stays resident
                pl.BlockSpec((1, N_PAD), lambda i: (0, 0)),       # stays resident
            ],
            out_specs=pl.BlockSpec((tile_m, N_PAD), lambda i: (i, 0)),
        ),
        compiler_params=pltpu.CompilerParams(
            dimension_semantics=("parallel",)),
        cost_estimate=cost,
    )(x_p, w_p, b_p)

    # Slice padding back off (cheap XLA slice).
    return y_pad[:B, :NUM_OUTPUTS]


if __name__ == "__main__":
    key = jax.random.PRNGKey(0)
    kx, kw, kb, kx2 = jax.random.split(key, 4)

    # Deterministic parameter init (shapes from nn.Linear(784, 10)).
    # PyTorch stores weight as (out, in); we keep the transposed (in, out) copy.
    bound = 1.0 / (NUM_INPUTS ** 0.5)
    w = jax.random.uniform(kw, (NUM_INPUTS, NUM_OUTPUTS),
                           minval=-bound, maxval=bound, dtype=jnp.float32)
    b = jax.random.uniform(kb, (NUM_OUTPUTS,),
                           minval=-bound, maxval=bound, dtype=jnp.float32)

    # Small aligned batch, f32 path.
    B = 16
    x = jax.random.normal(kx, (B, 1, 28, 28), dtype=jnp.float32)
    y = jax.block_until_ready(softmaxnet_forward(x, w, b))
    y_ref = x.reshape(B, -1) @ w + b
    assert y.shape == (B, NUM_OUTPUTS)
    assert jnp.allclose(y, y_ref, atol=1e-5, rtol=1e-5)

    # Ragged batch (not a multiple of the tile) — exercises the pad/slice path.
    B2 = 37
    x2 = jax.random.normal(kx2, (B2, 1, 28, 28), dtype=jnp.float32)
    y2 = jax.block_until_ready(softmaxnet_forward(x2, w, b))
    y2_ref = x2.reshape(B2, -1) @ w + b
    assert y2.shape == (B2, NUM_OUTPUTS)
    assert jnp.allclose(y2, y2_ref, atol=1e-5, rtol=1e-5)

    # bf16 input/weight stream (halves HBM bytes on a memory-bound kernel),
    # still accumulated in f32 on the MXU.
    y_bf = jax.block_until_ready(
        softmaxnet_forward(x, w, b, compute_dtype=jnp.bfloat16))
    assert y_bf.shape == (B, NUM_OUTPUTS)
    assert jnp.allclose(y_bf, y_ref, atol=5e-2, rtol=5e-2)

    print("KERNEL_OK")
</pallas_src>

<mosaic_0001>
module attributes {stable_mosaic.version = 11 : i64} {
  func.func @_softmaxnet_kernel(%arg0: i32, %arg1: memref<16x896xf32, #tpu.memory_space<vmem>>, %arg2: memref<896x128xf32, #tpu.memory_space<vmem>>, %arg3: memref<1x128xf32, #tpu.memory_space<vmem>>, %arg4: memref<16x128xf32, #tpu.memory_space<vmem>>) attributes {dimension_semantics = [#tpu.dimension_semantics<parallel>], iteration_bounds = array<i64: 1>, scalar_prefetch = 0 : i64, scratch_operands = 0 : i64, tpu.core_type = #tpu.core_type<tc>, window_params = [{transform_indices = @transform_0, window_bounds = array<i64: 16, 896>}, {pipeline_mode = #tpu.pipeline_mode<synchronous>, transform_indices = @transform_1, window_bounds = array<i64: 896, 128>}, {pipeline_mode = #tpu.pipeline_mode<synchronous>, transform_indices = @transform_2, window_bounds = array<i64: 1, 128>}, {transform_indices = @transform_3, window_bounds = array<i64: 16, 128>}]} {
    %c0 = arith.constant 0 : index
    %c0_0 = arith.constant 0 : index
    %0 = vector.load %arg1[%c0, %c0_0] : memref<16x896xf32, #tpu.memory_space<vmem>>, vector<16x896xf32>
    %c0_1 = arith.constant 0 : index
    %c0_2 = arith.constant 0 : index
    %1 = vector.load %arg2[%c0_1, %c0_2] : memref<896x128xf32, #tpu.memory_space<vmem>>, vector<896x128xf32>
    %cst = arith.constant dense<0.000000e+00> : vector<16x128xf32>
    %2 = tpu.matmul %0, %1, %cst {dimension_numbers = #tpu.dot_dimension_numbers<[1], [0], [0], [1], [0, 0, 1, 1], [], []>} : vector<16x896xf32>, vector<896x128xf32>, vector<16x128xf32> -> vector<16x128xf32>
    %c0_3 = arith.constant 0 : index
    %c0_4 = arith.constant 0 : index
    %3 = vector.load %arg3[%c0_3, %c0_4] : memref<1x128xf32, #tpu.memory_space<vmem>>, vector<1x128xf32>
    %4 = vector.broadcast %3 : vector<1x128xf32> to vector<16x128xf32>
    %5 = arith.addf %2, %4 : vector<16x128xf32>
    %c0_5 = arith.constant 0 : index
    %c0_6 = arith.constant 0 : index
    %6 = vector.load %arg4[%c0_5, %c0_6] : memref<16x128xf32, #tpu.memory_space<vmem>>, vector<16x128xf32>
    tpu.vector_store %arg4[%c0_5, %c0_6], %5 {strides = array<i32>} : memref<16x128xf32, #tpu.memory_space<vmem>>, vector<16x128xf32>,
    return
  }
  func.func @transform_0(%arg0: i32) -> (i32, i32) {
    %c0_i32 = arith.constant 0 : i32
    %c0_i32_0 = arith.constant 0 : i32
    return %arg0, %c0_i32 : i32, i32
  }
  func.func @transform_1(%arg0: i32) -> (i32, i32) {
    %c0_i32 = arith.constant 0 : i32
    %c0_i32_0 = arith.constant 0 : i32
    %c0_i32_1 = arith.constant 0 : i32
    return %c0_i32, %c0_i32_0 : i32, i32
  }
  func.func @transform_2(%arg0: i32) -> (i32, i32) {
    %c0_i32 = arith.constant 0 : i32
    %c0_i32_0 = arith.constant 0 : i32
    %c0_i32_1 = arith.constant 0 : i32
    return %c0_i32, %c0_i32_0 : i32, i32
  }
  func.func @transform_3(%arg0: i32) -> (i32, i32) {
    %c0_i32 = arith.constant 0 : i32
    %c0_i32_0 = arith.constant 0 : i32
    return %arg0, %c0_i32 : i32, i32
  }
}

</mosaic_0001>

<bundles_post_ra>
// kernel: softmaxnet_forward.1
= control target key start
LH: loop header
LB: loop body
LE: loop exit
PB: predicated region body
PF: predicated region fallthrough
CT: control target
= control target key end

     0   :  { %s779_s0 = inlined_call_operand.vmem [shape: f32[16,896], index: 0, kind: input, shape index: {}]   ;;  %s780_s1 = inlined_call_operand.vmem [shape: f32[896,128], index: 1, kind: input, shape index: {}]   ;;  %s781_s2 = inlined_call_operand.vmem [shape: f32[1,128], index: 2, kind: input, shape index: {}]   ;;  %s782_s3 = inlined_call_operand.hbm [shape: f32[16,128], index: 3, kind: output, shape index: {}]  }
   0x1   :  { %v44_v0 = vld [vmem:[%s780_s1 + $0x78] sm:$0xff]  ;;  %v43_v4 = vld [vmem:[%s780_s1 + $0x70] sm:$0xff]  ;;  %v42_v8 = vld [vmem:[%s780_s1 + $0x68] sm:$0xff] }
   0x2   :  { %v60_v1 = vld [vmem:[%s780_s1 + $0xf8] sm:$0xff]  ;;  %145 = vmatpush.msra.mxu0 %v44_v0  ;;  %v59_v5 = vld [vmem:[%s780_s1 + $0xf0] sm:$0xff]  ;;  %v58_v9 = vld [vmem:[%s780_s1 + $0xe8] sm:$0xff] }
   0x3   :  { %v76_v2 = vld [vmem:[%s780_s1 + $0x178] sm:$0xff]  ;;  %168 = vmatpush.msra.mxu1 %v60_v1  ;;  %v75_v6 = vld [vmem:[%s780_s1 + $0x170] sm:$0xff]  ;;  %v74_v10 = vld [vmem:[%s780_s1 + $0x168] sm:$0xff] }
   0x4   :  { %v92_v3 = vld [vmem:[%s780_s1 + $0x1f8] sm:$0xff]  ;;  %191 = vmatpush.msra.mxu2 %v76_v2  ;;  %v91_v7 = vld [vmem:[%s780_s1 + $0x1f0] sm:$0xff]  ;;  %146 = vmatpush.msra.mxu0 %v43_v4  ;;  %v90_v11 = vld [vmem:[%s780_s1 + $0x1e8] sm:$0xff] }
   0x5   :  { %214 = vmatpush.msra.mxu3 %v92_v3  ;;  %169 = vmatpush.msra.mxu1 %v59_v5  ;;  %v41_v12 = vld [vmem:[%s780_s1 + $0x60] sm:$0xff]  ;;  %v40_v16 = vld [vmem:[%s780_s1 + $0x58] sm:$0xff]  ;;  %v39_v20 = vld [vmem:[%s780_s1 + $0x50] sm:$0xff] }
   0x6   :  { %192 = vmatpush.msra.mxu2 %v75_v6  ;;  %v57_v13 = vld [vmem:[%s780_s1 + $0xe0] sm:$0xff]  ;;  %147 = vmatpush.msra.mxu0 %v42_v8  ;;  %v56_v17 = vld [vmem:[%s780_s1 + $0xd8] sm:$0xff]  ;;  %v55_v21 = vld [vmem:[%s780_s1 + $0xd0] sm:$0xff] }
   0x7   :  { %215 = vmatpush.msra.mxu3 %v91_v7  ;;  %170 = vmatpush.msra.mxu1 %v58_v9  ;;  %v73_v14 = vld [vmem:[%s780_s1 + $0x160] sm:$0xff]  ;;  %v72_v18 = vld [vmem:[%s780_s1 + $0x158] sm:$0xff]  ;;  %v71_v22 = vld [vmem:[%s780_s1 + $0x150] sm:$0xff] }
   0x8   :  { %v89_v15 = vld [vmem:[%s780_s1 + $0x1e0] sm:$0xff]  ;;  %193 = vmatpush.msra.mxu2 %v74_v10  ;;  %148 = vmatpush.msra.mxu0 %v41_v12  ;;  %v88_v19 = vld [vmem:[%s780_s1 + $0x1d8] sm:$0xff]  ;;  %v87_v23 = vld [vmem:[%s780_s1 + $0x1d0] sm:$0xff] }
   0x9   :  { %216 = vmatpush.msra.mxu3 %v90_v11  ;;  %171 = vmatpush.msra.mxu1 %v57_v13  ;;  %v38_v24 = vld [vmem:[%s780_s1 + $0x48] sm:$0xff]  ;;  %v37_v28 = vld [vmem:[%s780_s1 + $0x40] sm:$0xff]  ;;  %v36_v32 = vld [vmem:[%s780_s1 + $0x38] sm:$0xff] }
   0xa   :  { %194 = vmatpush.msra.mxu2 %v73_v14  ;;  %149 = vmatpush.msra.mxu0 %v40_v16  ;;  %v54_v25 = vld [vmem:[%s780_s1 + $0xc8] sm:$0xff]  ;;  %v53_v29 = vld [vmem:[%s780_s1 + $0xc0] sm:$0xff]  ;;  %v52_v33 = vld [vmem:[%s780_s1 + $0xb8] sm:$0xff] }
   0xb   :  { %217 = vmatpush.msra.mxu3 %v89_v15  ;;  %172 = vmatpush.msra.mxu1 %v56_v17  ;;  %v70_v26 = vld [vmem:[%s780_s1 + $0x148] sm:$0xff]  ;;  %v69_v30 = vld [vmem:[%s780_s1 + $0x140] sm:$0xff]  ;;  %v68_v34 = vld [vmem:[%s780_s1 + $0x138] sm:$0xff] }
   0xc   :  { %195 = vmatpush.msra.mxu2 %v72_v18  ;;  %150 = vmatpush.msra.mxu0 %v39_v20  ;;  %v86_v27 = vld [vmem:[%s780_s1 + $0x1c8] sm:$0xff]  ;;  %v85_v31 = vld [vmem:[%s780_s1 + $0x1c0] sm:$0xff]  ;;  %v84_v35 = vld [vmem:[%s780_s1 + $0x1b8] sm:$0xff] }
   0xd   :  { %218 = vmatpush.msra.mxu3 %v88_v19  ;;  %173 = vmatpush.msra.mxu1 %v55_v21  ;;  %v35_v36 = vld [vmem:[%s780_s1 + $0x30] sm:$0xff]  ;;  %v34_v40 = vld [vmem:[%s780_s1 + $0x28] sm:$0xff]  ;;  %v33_v44 = vld [vmem:[%s780_s1 + $0x20] sm:$0xff] }
   0xe   :  { %196 = vmatpush.msra.mxu2 %v71_v22  ;;  %151 = vmatpush.msra.mxu0 %v38_v24  ;;  %v51_v37 = vld [vmem:[%s780_s1 + $0xb0] sm:$0xff]  ;;  %v50_v41 = vld [vmem:[%s780_s1 + $0xa8] sm:$0xff]  ;;  %v49_v45 = vld [vmem:[%s780_s1 + $0xa0] sm:$0xff] }
   0xf   :  { %219 = vmatpush.msra.mxu3 %v87_v23  ;;  %174 = vmatpush.msra.mxu1 %v54_v25  ;;  %v67_v38 = vld [vmem:[%s780_s1 + $0x130] sm:$0xff]  ;;  %v66_v42 = vld [vmem:[%s780_s1 + $0x128] sm:$0xff]  ;;  %v65_v46 = vld [vmem:[%s780_s1 + $0x120] sm:$0xff] }
  0x10   :  { %197 = vmatpush.msra.mxu2 %v70_v26  ;;  %152 = vmatpush.msra.mxu0 %v37_v28  ;;  %v83_v39 = vld [vmem:[%s780_s1 + $0x1b0] sm:$0xff]  ;;  %v82_v43 = vld [vmem:[%s780_s1 + $0x1a8] sm:$0xff]  ;;  %v81_v47 = vld [vmem:[%s780_s1 + $0x1a0] sm:$0xff] }
  0x11   :  { %220 = vmatpush.msra.mxu3 %v86_v27  ;;  %175 = vmatpush.msra.mxu1 %v53_v29  ;;  %v32_v48 = vld [vmem:[%s780_s1 + $0x18] sm:$0xff]  ;;  %v31_v52 = vld [vmem:[%s780_s1 + $0x10] sm:$0xff]  ;;  %v30_v56 = vld [vmem:[%s780_s1 + $0x8] sm:$0xff] }
  0x12   :  { %198 = vmatpush.msra.mxu2 %v69_v30  ;;  %153 = vmatpush.msra.mxu0 %v36_v32  ;;  %v48_v49 = vld [vmem:[%s780_s1 + $0x98] sm:$0xff]  ;;  %v47_v53 = vld [vmem:[%s780_s1 + $0x90] sm:$0xff]  ;;  %v46_v57 = vld [vmem:[%s780_s1 + $0x88] sm:$0xff] }
  0x13   :  { %221 = vmatpush.msra.mxu3 %v85_v31  ;;  %176 = vmatpush.msra.mxu1 %v52_v33  ;;  %v64_v50 = vld [vmem:[%s780_s1 + $0x118] sm:$0xff]  ;;  %v63_v54 = vld [vmem:[%s780_s1 + $0x110] sm:$0xff]  ;;  %v62_v58 = vld [vmem:[%s780_s1 + $0x108] sm:$0xff] }
  0x14   :  { %199 = vmatpush.msra.mxu2 %v68_v34  ;;  %154 = vmatpush.msra.mxu0 %v35_v36  ;;  %v80_v51 = vld [vmem:[%s780_s1 + $0x198] sm:$0xff]  ;;  %v79_v55 = vld [vmem:[%s780_s1 + $0x190] sm:$0xff]  ;;  %v78_v59 = vld [vmem:[%s780_s1 + $0x188] sm:$0xff] }
  0x15   :  { %222 = vmatpush.msra.mxu3 %v84_v35  ;;  %177 = vmatpush.msra.mxu1 %v51_v37  ;;  %v29_v60 = vld [vmem:[%s780_s1] sm:$0xff]  ;;  %v108_v0 = vld [vmem:[%s780_s1 + $0x278] sm:$0xff]  ;;  %v107_v3 = vld [vmem:[%s780_s1 + $0x270] sm:$0xff] }
  0x16   :  { %200 = vmatpush.msra.mxu2 %v67_v38  ;;  %155 = vmatpush.msra.mxu0 %v34_v40  ;;  %v45_v61 = vld [vmem:[%s780_s1 + $0x80] sm:$0xff]  ;;  %v124_v1 = vld [vmem:[%s780_s1 + $0x2f8] sm:$0xff]  ;;  %v123_v4 = vld [vmem:[%s780_s1 + $0x2f0] sm:$0xff] }
  0x17   :  { %223 = vmatpush.msra.mxu3 %v83_v39  ;;  %178 = vmatpush.msra.mxu1 %v50_v41  ;;  %v61_v62 = vld [vmem:[%s780_s1 + $0x100] sm:$0xff]  ;;  %v140_v2 = vld [vmem:[%s780_s1 + $0x378] sm:$0xff]  ;;  %v139_v5 = vld [vmem:[%s780_s1 + $0x370] sm:$0xff] }
  0x18   :  { %201 = vmatpush.msra.mxu2 %v66_v42  ;;  %156 = vmatpush.msra.mxu0 %v33_v44  ;;  %v77_v63 = vld [vmem:[%s780_s1 + $0x180] sm:$0xff]  ;;  %v106_v6 = vld [vmem:[%s780_s1 + $0x268] sm:$0xff]  ;;  %v104_v12 = vld [vmem:[%s780_s1 + $0x258] sm:$0xff] }
  0x19   :  { %224 = vmatpush.msra.mxu3 %v82_v43  ;;  %179 = vmatpush.msra.mxu1 %v49_v45  ;;  %v122_v7 = vld [vmem:[%s780_s1 + $0x2e8] sm:$0xff]  ;;  %v105_v9 = vld [vmem:[%s780_s1 + $0x260] sm:$0xff]  ;;  %v120_v13 = vld [vmem:[%s780_s1 + $0x2d8] sm:$0xff] }
  0x1a   :  { %202 = vmatpush.msra.mxu2 %v65_v46  ;;  %157 = vmatpush.msra.mxu0 %v32_v48  ;;  %v138_v8 = vld [vmem:[%s780_s1 + $0x368] sm:$0xff]  ;;  %v121_v10 = vld [vmem:[%s780_s1 + $0x2e0] sm:$0xff]  ;;  %v136_v14 = vld [vmem:[%s780_s1 + $0x358] sm:$0xff] }
  0x1b   :  { %225 = vmatpush.msra.mxu3 %v81_v47  ;;  %180 = vmatpush.msra.mxu1 %v48_v49  ;;  %v137_v11 = vld [vmem:[%s780_s1 + $0x360] sm:$0xff]  ;;  %v103_v15 = vld [vmem:[%s780_s1 + $0x250] sm:$0xff]  ;;  %v102_v18 = vld [vmem:[%s780_s1 + $0x248] sm:$0xff] }
  0x1c   :  { %203 = vmatpush.msra.mxu2 %v64_v50  ;;  %158 = vmatpush.msra.mxu0 %v31_v52  ;;  %v119_v16 = vld [vmem:[%s780_s1 + $0x2d0] sm:$0xff] }
  0x1d   :  { %226 = vmatpush.msra.mxu3 %v80_v51  ;;  %181 = vmatpush.msra.mxu1 %v47_v53  ;;  %v135_v17 = vld [vmem:[%s780_s1 + $0x350] sm:$0xff] }
  0x1e   :  { %204 = vmatpush.msra.mxu2 %v63_v54  ;;  %159 = vmatpush.msra.mxu0 %v30_v56 }
  0x1f   :  { %227 = vmatpush.msra.mxu3 %v79_v55  ;;  %182 = vmatpush.msra.mxu1 %v46_v57 }
  0x20   :  { %205 = vmatpush.msra.mxu2 %v62_v58  ;;  %160 = vmatpush.msra.mxu0 %v29_v60 }
  0x21   :  { %228 = vmatpush.msra.mxu3 %v78_v59  ;;  %183 = vmatpush.msra.mxu1 %v45_v61 }
  0x22   :  { %206 = vmatpush.msra.mxu2 %v61_v62  ;;  %237 = vmatpush.msrb.mxu0 %v108_v0 }
  0x23   :  { %229 = vmatpush.msra.mxu3 %v77_v63  ;;  %260 = vmatpush.msrb.mxu1 %v124_v1 }
  0x24   :  { %283 = vmatpush.msrb.mxu2 %v140_v2  ;;  %238 = vmatpush.msrb.mxu0 %v107_v3 }
  0x25   :  { %326 = vmatpush.msrb.mxu3 %v108_v0  ;;  %261 = vmatpush.msrb.mxu1 %v123_v4 }
  0x26   :  { %284 = vmatpush.msrb.mxu2 %v139_v5  ;;  %239 = vmatpush.msrb.mxu0 %v106_v6 }
  0x27   :  { %327 = vmatpush.msrb.mxu3 %v107_v3  ;;  %262 = vmatpush.msrb.mxu1 %v122_v7 }
  0x28   :  { %285 = vmatpush.msrb.mxu2 %v138_v8  ;;  %240 = vmatpush.msrb.mxu0 %v105_v9 }
  0x29   :  { %328 = vmatpush.msrb.mxu3 %v106_v6  ;;  %263 = vmatpush.msrb.mxu1 %v121_v10 }
  0x2a   :  { %286 = vmatpush.msrb.mxu2 %v137_v11  ;;  %241 = vmatpush.msrb.mxu0 %v104_v12 }
  0x2b   :  { %329 = vmatpush.msrb.mxu3 %v105_v9  ;;  %264 = vmatpush.msrb.mxu1 %v120_v13 }
  0x2c   :  { %287 = vmatpush.msrb.mxu2 %v136_v14 }
  0x2d   :  { %330 = vmatpush.msrb.mxu3 %v104_v12 }
  0x2e   :  { %8 = vsyncpa [#allocation3], 0  ;;  %242 = vmatpush.msrb.mxu0 %v103_v15  ;;  %v118_v19 = vld [vmem:[%s780_s1 + $0x2c8] sm:$0xff]  ;;  %265 = vmatpush.msrb.mxu1 %v119_v16  ;;  %v101_v21 = vld [vmem:[%s780_s1 + $0x240] sm:$0xff]  ;;  %s314_s24 = sshll.u32 %s782_s3, 4  ;;  %s373_s25 = smov 128   ;;  %s315_s24 = int_to_ptr.hbm [resolvable:$true] %s314_s24 }
  0x2f   :  { %331 = vmatpush.msrb.mxu3 %v103_v15  ;;  %v134_v20 = vld [vmem:[%s780_s1 + $0x348] sm:$0xff]  ;;  %288 = vmatpush.msrb.mxu2 %v135_v17  ;;  %v117_v22 = vld [vmem:[%s780_s1 + $0x2c0] sm:$0xff]  ;;  %v17_v26 = vld [vmem:[%s779_s0 + $0x10] sm:$0xff]  ;;  %s374_s26 = smov 8  }
  0x30   :  { %243 = vmatpush.msrb.mxu0 %v102_v18  ;;  %v133_v23 = vld [vmem:[%s780_s1 + $0x340] sm:$0xff]  ;;  %266 = vmatpush.msrb.mxu1 %v118_v19  ;;  %v16_v25 = vld [vmem:[%s779_s0 + $0x8] sm:$0xff]  ;;  %v18_v27 = vld [vmem:[%s779_s0 + $0x18] sm:$0xff] }
  0x31   :  { %332 = vmatpush.msrb.mxu3 %v102_v18  ;;  %289 = vmatpush.msrb.mxu2 %v134_v20  ;;  %v15_v24 = vld [vmem:[%s779_s0] sm:$0xff]  ;;  %v100_v28 = vld [vmem:[%s780_s1 + $0x238] sm:$0xff]  ;;  %v99_v31 = vld [vmem:[%s780_s1 + $0x230] sm:$0xff] }
  0x32   :  { %244 = vmatpush.msrb.mxu0 %v101_v21  ;;  %267 = vmatpush.msrb.mxu1 %v117_v22  ;;  %v116_v29 = vld [vmem:[%s780_s1 + $0x2b8] sm:$0xff]  ;;  %v115_v32 = vld [vmem:[%s780_s1 + $0x2b0] sm:$0xff]  ;;  %v98_v34 = vld [vmem:[%s780_s1 + $0x228] sm:$0xff] }
  0x33   :  { %333 = vmatpush.msrb.mxu3 %v101_v21  ;;  %290 = vmatpush.msrb.mxu2 %v133_v23  ;;  %v132_v30 = vld [vmem:[%s780_s1 + $0x338] sm:$0xff]  ;;  %v131_v33 = vld [vmem:[%s780_s1 + $0x330] sm:$0xff]  ;;  %v114_v35 = vld [vmem:[%s780_s1 + $0x2a8] sm:$0xff] }
  0x34   :  { %161 = vmatmul.f32.vlgmr.msra.gmra.mxu0 %v15_v24  ;;  %184 = vmatmul.f32.vlgmr.msra.gmra.mxu1 %v16_v25  ;;  %v130_v36 = vld [vmem:[%s780_s1 + $0x328] sm:$0xff]  ;;  %v97_v37 = vld [vmem:[%s780_s1 + $0x220] sm:$0xff]  ;;  %v22_v40 = vld [vmem:[%s779_s0 + $0x38] sm:$0xff] }
  0x35   :  { %207 = vmatmul.f32.vlgmr.msra.gmra.mxu2 %v17_v26  ;;  %230 = vmatmul.f32.vlgmr.msra.gmra.mxu3 %v18_v27  ;;  %v113_v38 = vld [vmem:[%s780_s1 + $0x2a0] sm:$0xff]  ;;  %v24_v42 = vld [vmem:[%s779_s0 + $0x48] sm:$0xff]  ;;  %v25_v43 = vld [vmem:[%s779_s0 + $0x50] sm:$0xff] }
  0x36   :  { %245 = vmatpush.msrb.mxu0 %v100_v28  ;;  %334 = vmatpush.msrb.mxu3 %v100_v28  ;;  %v129_v39 = vld [vmem:[%s780_s1 + $0x320] sm:$0xff]  ;;  %v96_v44 = vld [vmem:[%s780_s1 + $0x218] sm:$0xff]  ;;  %v95_v47 = vld [vmem:[%s780_s1 + $0x210] sm:$0xff] }
  0x37   :  { %268 = vmatpush.msrb.mxu1 %v116_v29  ;;  %291 = vmatpush.msrb.mxu2 %v132_v30  ;;  %v23_v41 = vld [vmem:[%s779_s0 + $0x40] sm:$0xff]  ;;  %v112_v45 = vld [vmem:[%s780_s1 + $0x298] sm:$0xff]  ;;  %v111_v48 = vld [vmem:[%s780_s1 + $0x290] sm:$0xff] }
  0x38   :  { %246 = vmatpush.msrb.mxu0 %v99_v31  ;;  %335 = vmatpush.msrb.mxu3 %v99_v31  ;;  %v128_v46 = vld [vmem:[%s780_s1 + $0x318] sm:$0xff]  ;;  %v127_v49 = vld [vmem:[%s780_s1 + $0x310] sm:$0xff]  ;;  %v94_v50 = vld [vmem:[%s780_s1 + $0x208] sm:$0xff] }
  0x39   :  { %269 = vmatpush.msrb.mxu1 %v115_v32  ;;  %292 = vmatpush.msrb.mxu2 %v131_v33  ;;  %v110_v51 = vld [vmem:[%s780_s1 + $0x288] sm:$0xff]  ;;  %v93_v53 = vld [vmem:[%s780_s1 + $0x200] sm:$0xff]  ;;  %v26_v57 = vld [vmem:[%s779_s0 + $0x58] sm:$0xff] }
  0x3a   :  { %247 = vmatpush.msrb.mxu0 %v98_v34  ;;  %336 = vmatpush.msrb.mxu3 %v98_v34  ;;  %v126_v52 = vld [vmem:[%s780_s1 + $0x308] sm:$0xff]  ;;  %v109_v54 = vld [vmem:[%s780_s1 + $0x280] sm:$0xff]  ;;  %v21_v59 = vld [vmem:[%s779_s0 + $0x30] sm:$0xff] }
  0x3b   :  { %270 = vmatpush.msrb.mxu1 %v114_v35  ;;  %293 = vmatpush.msrb.mxu2 %v130_v36  ;;  %v125_v55 = vld [vmem:[%s780_s1 + $0x300] sm:$0xff]  ;;  %v20_v58 = vld [vmem:[%s779_s0 + $0x28] sm:$0xff] }
  0x3c   :  { %248 = vmatpush.msrb.mxu0 %v97_v37  ;;  %337 = vmatpush.msrb.mxu3 %v97_v37  ;;  %v19_v56 = vld [vmem:[%s779_s0 + $0x20] sm:$0xff]  ;;  %v28_v61 = vld [vmem:[%s779_s0 + $0x68] sm:$0xff] }
  0x3d   :  { %271 = vmatpush.msrb.mxu1 %v113_v38  ;;  %294 = vmatpush.msrb.mxu2 %v129_v39  ;;  %v27_v60 = vld [vmem:[%s779_s0 + $0x60] sm:$0xff]  ;;  %s372_s0 = smov [#allocation2]  }
  0x3e   :  { %164 = vmatmul.f32.gmra.mxu0 %v22_v40  ;;  %187 = vmatmul.f32.gmra.mxu1 %v23_v41  ;;  %v345_v0 = vld [vmem:[%s781_s2] ss:$0 sm:$0xff]  ;;  %s312_s2 = sshll.u32 %s372_s0, 4  ;;  %s313_s2 = int_to_ptr.vmem [resolvable:$true] %s312_s2 }
  0x3f   :  { %210 = vmatmul.f32.gmra.mxu2 %v24_v42  ;;  %233 = vmatmul.f32.gmra.mxu3 %v25_v43 }
  0x40   :  { %249 = vmatpush.msrb.mxu0 %v96_v44  ;;  %338 = vmatpush.msrb.mxu3 %v96_v44 }
  0x41   :  { %272 = vmatpush.msrb.mxu1 %v112_v45  ;;  %295 = vmatpush.msrb.mxu2 %v128_v46 }
  0x42   :  { %250 = vmatpush.msrb.mxu0 %v95_v47  ;;  %339 = vmatpush.msrb.mxu3 %v95_v47 }
  0x43   :  { %273 = vmatpush.msrb.mxu1 %v111_v48  ;;  %296 = vmatpush.msrb.mxu2 %v127_v49 }
  0x44   :  { %251 = vmatpush.msrb.mxu0 %v94_v50  ;;  %340 = vmatpush.msrb.mxu3 %v94_v50 }
  0x45   :  { %274 = vmatpush.msrb.mxu1 %v110_v51  ;;  %297 = vmatpush.msrb.mxu2 %v126_v52 }
  0x46   :  { %252 = vmatpush.msrb.mxu0 %v93_v53  ;;  %341 = vmatpush.msrb.mxu3 %v93_v53 }
  0x47   :  { %275 = vmatpush.msrb.mxu1 %v109_v54  ;;  %298 = vmatpush.msrb.mxu2 %v125_v55 }
  0x48   :  { %253 = vmatmul.f32.vlgmr.msrb.gmra.mxu0 %v19_v56  ;;  %256 = vmatmul.f32.vlgmr.msrb.gmra.mxu3 %v26_v57 }
  0x49   :  { %276 = vmatmul.f32.vlgmr.msrb.gmra.mxu1 %v20_v58  ;;  %299 = vmatmul.f32.vlgmr.msrb.gmra.mxu2 %v21_v59 }
  0x51   :  { %279 = vmatmul.f32.gmra.mxu1 %v27_v60  ;;  %302 = vmatmul.f32.gmra.mxu2 %v28_v61 }
  0xb1   :  { %v162_v62 = vpop.f32.mrf.mxu0  ;;  %v185_v63 = vpop.f32.mrf.mxu1 }
  0xb2   :  { %v163_v3 = vadd.f32 %v345_v0, %v162_v62 }
  0xb4   :  { %v186_v6 = vadd.f32 %v185_v63, %v163_v3 }
  0xb8   :  { %v208_v1 = vpop.f32.mrf.mxu2  ;;  %v231_v2 = vpop.f32.mrf.mxu3 }
  0xb9   :  { %v209_v7 = vadd.f32 %v208_v1, %v186_v6 }
  0xbb   :  { %v165_v4 = vpop.f32.mrf.mxu0  ;;  %v188_v5 = vpop.f32.mrf.mxu1  ;;  %v232_v11 = vadd.f32 %v231_v2, %v209_v7 }
  0xbc   :  { %v166_v8 = vadd.f32 %v345_v0, %v165_v4 }
  0xbe   :  { %v189_v12 = vadd.f32 %v188_v5, %v166_v8 }
  0xc2   :  { %v211_v9 = vpop.f32.mrf.mxu2  ;;  %v234_v10 = vpop.f32.mrf.mxu3 }
  0xc3   :  { %v212_v16 = vadd.f32 %v211_v9, %v189_v12 }
  0xc5   :  { %v254_v13 = vpop.f32.mrf.mxu0  ;;  %v235_v20 = vadd.f32 %v234_v10, %v212_v16 }
  0xc6   :  { %v277_v14 = vpop.f32.mrf.mxu1  ;;  %v255_v15 = vadd.f32 %v254_v13, %v232_v11 }
  0xc8   :  { %v278_v17 = vadd.f32 %v277_v14, %v255_v15 }
  0xcb   :  { %v257_v18 = vpop.f32.mrf.mxu3 }
  0xcc   :  { %v300_v19 = vpop.f32.mrf.mxu2  ;;  %v258_v22 = vadd.f32 %v257_v18, %v235_v20 }
  0xcd   :  { %v301_v21 = vadd.f32 %v300_v19, %v278_v17 }
  0xce   :  { %v280_v23 = vpop.f32.mrf.mxu1 }
  0xcf   :  { %306 = vst [vmem:[#allocation2] sm:$0xff] %v301_v21  ;;  %v281_v24 = vadd.f32 %v280_v23, %v258_v22 }
  0xd4   :  { %v303_v25 = vpop.f32.mrf.mxu2 }
  0xd5   :  { %v304_v26 = vadd.f32 %v303_v25, %v281_v24 }
  0xd7   :  { %307 = vst [vmem:[#allocation2 + $0x8] sm:$0xff] %v304_v26 }
  0xd8   :  { %320 = dma.vmem_to_hbm [thread:$0]  %s313_s2, 256, %s315_s24, [#allocation3], %s373_s25, %s373_s25, %s374_s26  }
  0xd9   :  { %370 = dma.done.wait [#allocation3], 256  }
  0xda   :  { %371 = vsyncadd [#allocation3], 4294967040 }
  0xdb   :  { %325 = vsyncpa [#allocation3], 1 }

</bundles_post_ra>
